<compile_context>
chip_gen: v7x
topology: tpu7x:2x2x1
jax: 0.10.0
libtpu: 0.0.40
codegen_flags: <defaults>
</compile_context>

<pallas_src>
import jax
import jax.numpy as jnp
from jax.experimental import pallas as pl
from jax.experimental.pallas import tpu as pltpu


def _luong_concat_kernel(q_ref, v_ref, wv_ref, wq_ref, wb_ref, vw_ref, vb_ref,
                         ctx_ref, w_ref, s_ref):
    # q_ref  : (1, TB, H)  query tile (input dtype)
    # v_ref  : (TB, S, H)  values tile (input dtype)
    # wv_ref : (H, Up)     W weight, values half (pre-transposed, lane-padded)
    # wq_ref : (H, Up)     W weight, query half
    # wb_ref : (1, Up)     W bias  (zero in padded lanes)
    # vw_ref : (1, Up)     V weight (zero in padded lanes -> padding is inert)
    # vb_ref : (1, 1)      V bias (f32)
    # ctx_ref: (TB, H), w_ref/s_ref: (TB, S)  — lane-dense outputs
    q = q_ref[0]                                   # (TB, H)
    vals = v_ref[...]                              # (TB, S, H)

    # Query projection + bias, shared across the sequence axis: (TB, Up).
    # Matmuls run in the input dtype (full MXU rate for bf16); accumulate f32.
    qproj = (jnp.dot(q, wq_ref[...], preferred_element_type=jnp.float32)
             + wb_ref[...].astype(jnp.float32))

    # Values projection on the MXU: (TB, S, Up), f32 accumulation.
    vproj = jax.lax.dot_general(
        vals, wv_ref[...],
        dimension_numbers=(((2,), (0,)), ((), ())),
        preferred_element_type=jnp.float32)

    hidden = jnp.tanh(vproj + qproj[:, None, :])   # (TB, S, Up) — EUP tanh (f32)

    # V projection: contract the (lane-padded) units axis -> (TB, S) score.
    score = (jnp.sum(hidden * vw_ref[...].astype(jnp.float32), axis=2)
             + vb_ref[...].astype(jnp.float32))    # (1,1) broadcasts

    # Exact softmax over the sequence (lane) axis.
    # NOTE: exact divide — pl.reciprocal(approx=True) exceeded the 1e-4
    # tolerance on the attention weights.
    m = jnp.max(score, axis=1, keepdims=True)      # (TB, 1)
    e = jnp.exp(score - m)                         # (TB, S)
    weights = e / jnp.sum(e, axis=1, keepdims=True)

    # Context = sum_s weights * values.  Per-batch M=1 matmuls have poor MXU
    # occupancy, so use a VPU multiply + sublane reduce, accumulating in f32.
    ctx = jnp.sum(weights[:, :, None] * vals.astype(jnp.float32), axis=1)

    s_ref[...] = score.astype(s_ref.dtype)
    w_ref[...] = weights.astype(w_ref.dtype)
    ctx_ref[...] = ctx.astype(ctx_ref.dtype)


def _vmem_limit_bytes():
    # Generation-aware scoped-VMEM limit: leave ~12 MiB headroom below the
    # physical capacity (64 MiB on v7x), cap at 96 MiB on the 128 MiB parts.
    try:
        cap = pltpu.get_tpu_info().vmem_capacity_bytes
    except Exception:
        cap = 64 * 1024 * 1024
    return int(min(96 * 1024 * 1024,
                   max(32 * 1024 * 1024, cap - 12 * 1024 * 1024)))


def _pick_tb(B, S, H, Up, itemsize, budget_bytes):
    # Per-batch-row working set: double-buffered values tile + the f32
    # temporaries materialized in the kernel (f32 values copy for the context
    # accumulate, vproj and hidden), plus the small output rows.
    per_batch = (2 * S * H * itemsize      # double-buffered values tile
                 + S * H * 4               # f32 values copy (context accumulate)
                 + 2 * S * Up * 4          # vproj + hidden f32 temporaries
                 + 4 * H + 8 * S)          # context / score / weights rows
    cap = max(1, budget_bytes // per_batch)
    # Prefer multiples of 8 (unmasked sublane tiles) while keeping >= 4 grid
    # steps (>= 2 per v7x TensorCore); then >= 2 steps.  Small batches fall
    # back to a single full-extent block (block dims == array dims).
    for min_steps in (4, 2):
        tb = (min(cap, B // min_steps) // 8) * 8
        if tb >= 8:
            return tb
    if cap >= B:
        return B
    return min(B, 8)


def luong_attention_concat(query, values, w_weight, w_bias, v_weight, v_bias):
    """query (1,B,H), values (B,S,H), W (U,2H)+b (U,), V (1,U)+b (1,)
       -> (context (B,H), attention_weights (B,S,1), score (B,S,1))."""
    assert query.ndim == 3 and query.shape[0] == 1
    _, B, H = query.shape
    Bv, S, Hv = values.shape
    assert Bv == B and Hv == H
    U = w_weight.shape[0]
    assert w_weight.shape == (U, 2 * H)
    assert v_weight.shape == (1, U)

    dt = values.dtype
    # Lane-pad the units axis to a multiple of 128 (MXU-N / VPU / EUP lane
    # width).  Padded V-weight lanes are zero, so the score is unchanged.
    Up = max(128, ((U + 127) // 128) * 128)

    # Split the concat projection: cat = [values, query] along features.
    wv = jnp.zeros((H, Up), dt).at[:, :U].set(
        jnp.transpose(w_weight[:, :H]).astype(dt))   # (H, Up) values half
    wq = jnp.zeros((H, Up), dt).at[:, :U].set(
        jnp.transpose(w_weight[:, H:]).astype(dt))   # (H, Up) query half
    wb = jnp.zeros((1, Up), dt).at[:, :U].set(w_bias.reshape(1, U).astype(dt))
    vw = jnp.zeros((1, Up), dt).at[:, :U].set(v_weight.reshape(1, U).astype(dt))
    vb = v_bias.reshape(1, 1).astype(jnp.float32)

    vmem_limit = _vmem_limit_bytes()
    weight_bytes = 2 * (2 * H * Up + 2 * Up) * dt.itemsize  # double-buffered weights
    budget = max(1 << 20, (vmem_limit - weight_bytes) // 4)
    TB = _pick_tb(B, S, H, Up, dt.itemsize, budget)

    # Pad the batch so TB divides it exactly (no ragged tail / TB=1 cliff).
    Bp = ((B + TB - 1) // TB) * TB
    if Bp != B:
        query = jnp.pad(query, ((0, 0), (0, Bp - B), (0, 0)))
        values = jnp.pad(values, ((0, Bp - B), (0, 0), (0, 0)))

    grid = (Bp // TB,)

    out_shapes = (
        jax.ShapeDtypeStruct((Bp, H), dt),   # context
        jax.ShapeDtypeStruct((Bp, S), dt),   # weights (lane-dense 2-D)
        jax.ShapeDtypeStruct((Bp, S), dt),   # score   (lane-dense 2-D)
    )

    grid_spec = pltpu.PrefetchScalarGridSpec(
        num_scalar_prefetch=0,
        grid=grid,
        in_specs=[
            pl.BlockSpec((1, TB, H), lambda b: (0, b, 0)),   # query tile
            pl.BlockSpec((TB, S, H), lambda b: (b, 0, 0)),   # values tile
            pl.BlockSpec((H, Up), lambda b: (0, 0)),         # W values half (resident)
            pl.BlockSpec((H, Up), lambda b: (0, 0)),         # W query half  (resident)
            pl.BlockSpec((1, Up), lambda b: (0, 0)),         # W bias
            pl.BlockSpec((1, Up), lambda b: (0, 0)),         # V weight
            pl.BlockSpec((1, 1), lambda b: (0, 0)),          # V bias
        ],
        out_specs=[
            pl.BlockSpec((TB, H), lambda b: (b, 0)),         # context
            pl.BlockSpec((TB, S), lambda b: (b, 0)),         # weights
            pl.BlockSpec((TB, S), lambda b: (b, 0)),         # score
        ],
    )

    ctx, w2d, s2d = pl.pallas_call(
        _luong_concat_kernel,
        out_shape=out_shapes,
        grid_spec=grid_spec,
        compiler_params=pltpu.CompilerParams(
            dimension_semantics=("parallel",),
            vmem_limit_bytes=vmem_limit),
    )(query, values, wv, wq, wb, vw, vb)

    # Drop batch padding and restore the PyTorch (B, S, 1) layout.
    ctx, w2d, s2d = ctx[:B], w2d[:B], s2d[:B]
    # TODO(synk): for B < 4 on v7x an S-tiled grid with an online-softmax
    # accumulator would give both TensorCores work; not needed for correctness.
    return ctx, w2d[..., None], s2d[..., None]


def _reference(query, values, w_weight, w_bias, v_weight, v_bias):
    # Pure-JAX mirror of the PyTorch forward for verification.
    B, S, H = values.shape
    q = jnp.squeeze(query, 0)[:, None, :]                  # (B, 1, H)
    q = jnp.broadcast_to(q, (B, S, H))                     # repeat along S
    cat = jnp.concatenate([values, q], axis=2)             # (B, S, 2H)
    hidden = jnp.tanh(cat @ w_weight.T + w_bias)           # (B, S, U)
    score = hidden @ v_weight.T + v_bias                   # (B, S, 1)
    w = jax.nn.softmax(score, axis=1)                      # (B, S, 1)
    ctx = jnp.sum(w * values, axis=1)                      # (B, H)
    return ctx, w, score


if __name__ == "__main__":
    B, S, H, U = 2, 8, 32, 16
    key = jax.random.PRNGKey(0)
    kq, kv, kw, kb, kvw, kvb = jax.random.split(key, 6)
    query = jax.random.normal(kq, (1, B, H), dtype=jnp.float32)
    values = jax.random.normal(kv, (B, S, H), dtype=jnp.float32)
    w_weight = jax.random.normal(kw, (U, 2 * H), dtype=jnp.float32) * 0.1
    w_bias = jax.random.normal(kb, (U,), dtype=jnp.float32) * 0.1
    v_weight = jax.random.normal(kvw, (1, U), dtype=jnp.float32) * 0.1
    v_bias = jax.random.normal(kvb, (1,), dtype=jnp.float32) * 0.1

    ctx, w, score = luong_attention_concat(query, values, w_weight, w_bias,
                                           v_weight, v_bias)
    jax.block_until_ready((ctx, w, score))

    ctx_r, w_r, score_r = _reference(query, values, w_weight, w_bias,
                                     v_weight, v_bias)
    assert jnp.allclose(score, score_r, atol=1e-4, rtol=1e-4)
    assert jnp.allclose(w, w_r, atol=1e-4, rtol=1e-4)
    assert jnp.allclose(ctx, ctx_r, atol=1e-4, rtol=1e-4)

    print("KERNEL_OK")
</pallas_src>

<mosaic_0001>
module attributes {stable_mosaic.version = 11 : i64} {
  func.func @_luong_concat_kernel(%arg0: i32, %arg1: memref<1x2x32xf32, #tpu.memory_space<vmem>>, %arg2: memref<2x8x32xf32, #tpu.memory_space<vmem>>, %arg3: memref<32x128xf32, #tpu.memory_space<vmem>>, %arg4: memref<32x128xf32, #tpu.memory_space<vmem>>, %arg5: memref<1x128xf32, #tpu.memory_space<vmem>>, %arg6: memref<1x128xf32, #tpu.memory_space<vmem>>, %arg7: memref<1x1xf32, #tpu.memory_space<vmem>>, %arg8: memref<2x32xf32, #tpu.memory_space<vmem>>, %arg9: memref<2x8xf32, #tpu.memory_space<vmem>>, %arg10: memref<2x8xf32, #tpu.memory_space<vmem>>) attributes {dimension_semantics = [#tpu.dimension_semantics<parallel>], iteration_bounds = array<i64: 1>, scalar_prefetch = 0 : i64, scratch_operands = 0 : i64, tpu.core_type = #tpu.core_type<tc>, window_params = [{transform_indices = @transform_0, window_bounds = array<i64: 1, 2, 32>}, {transform_indices = @transform_1, window_bounds = array<i64: 2, 8, 32>}, {pipeline_mode = #tpu.pipeline_mode<synchronous>, transform_indices = @transform_2, window_bounds = array<i64: 32, 128>}, {pipeline_mode = #tpu.pipeline_mode<synchronous>, transform_indices = @transform_3, window_bounds = array<i64: 32, 128>}, {pipeline_mode = #tpu.pipeline_mode<synchronous>, transform_indices = @transform_4, window_bounds = array<i64: 1, 128>}, {pipeline_mode = #tpu.pipeline_mode<synchronous>, transform_indices = @transform_5, window_bounds = array<i64: 1, 128>}, {pipeline_mode = #tpu.pipeline_mode<synchronous>, transform_indices = @transform_6, window_bounds = array<i64: 1, 1>}, {transform_indices = @transform_7, window_bounds = array<i64: 2, 32>}, {transform_indices = @transform_8, window_bounds = array<i64: 2, 8>}, {transform_indices = @transform_9, window_bounds = array<i64: 2, 8>}]} {
    %c0 = arith.constant 0 : index
    %c0_0 = arith.constant 0 : index
    %c0_1 = arith.constant 0 : index
    %0 = vector.load %arg1[%c0, %c0_0, %c0_1] : memref<1x2x32xf32, #tpu.memory_space<vmem>>, vector<1x2x32xf32>
    %1 = vector.shape_cast %0 : vector<1x2x32xf32> to vector<2x32xf32>
    %c0_2 = arith.constant 0 : index
    %c0_3 = arith.constant 0 : index
    %c0_4 = arith.constant 0 : index
    %2 = vector.load %arg2[%c0_2, %c0_3, %c0_4] : memref<2x8x32xf32, #tpu.memory_space<vmem>>, vector<2x8x32xf32>
    %c0_5 = arith.constant 0 : index
    %c0_6 = arith.constant 0 : index
    %3 = vector.load %arg4[%c0_5, %c0_6] : memref<32x128xf32, #tpu.memory_space<vmem>>, vector<32x128xf32>
    %cst = arith.constant dense<0.000000e+00> : vector<2x128xf32>
    %4 = tpu.matmul %1, %3, %cst {dimension_numbers = #tpu.dot_dimension_numbers<[1], [0], [0], [1], [0, 0, 1, 1], [], []>} : vector<2x32xf32>, vector<32x128xf32>, vector<2x128xf32> -> vector<2x128xf32>
    %c0_7 = arith.constant 0 : index
    %c0_8 = arith.constant 0 : index
    %5 = vector.load %arg5[%c0_7, %c0_8] : memref<1x128xf32, #tpu.memory_space<vmem>>, vector<1x128xf32>
    %6 = vector.broadcast %5 : vector<1x128xf32> to vector<2x128xf32>
    %7 = arith.addf %4, %6 : vector<2x128xf32>
    %c0_9 = arith.constant 0 : index
    %c0_10 = arith.constant 0 : index
    %8 = vector.load %arg3[%c0_9, %c0_10] : memref<32x128xf32, #tpu.memory_space<vmem>>, vector<32x128xf32>
    %cst_11 = arith.constant dense<0.000000e+00> : vector<2x8x128xf32>
    %9 = tpu.matmul %2, %8, %cst_11 {dimension_numbers = #tpu.dot_dimension_numbers<[2], [0], [0, 1], [1], [0, 0, 0, 1, 1, 1], [], []>} : vector<2x8x32xf32>, vector<32x128xf32>, vector<2x8x128xf32> -> vector<2x8x128xf32>
    %10 = vector.shape_cast %7 : vector<2x128xf32> to vector<2x1x128xf32>
    %11 = vector.broadcast %10 : vector<2x1x128xf32> to vector<2x8x128xf32>
    %12 = arith.addf %9, %11 : vector<2x8x128xf32>
    %13 = math.tanh %12 : vector<2x8x128xf32>
    %c0_12 = arith.constant 0 : index
    %c0_13 = arith.constant 0 : index
    %14 = vector.load %arg6[%c0_12, %c0_13] : memref<1x128xf32, #tpu.memory_space<vmem>>, vector<1x128xf32>
    %15 = vector.shape_cast %14 : vector<1x128xf32> to vector<1x1x128xf32>
    %16 = vector.broadcast %15 : vector<1x1x128xf32> to vector<2x8x128xf32>
    %17 = arith.mulf %13, %16 : vector<2x8x128xf32>
    %cst_14 = arith.constant dense<0.000000e+00> : vector<2x8xf32>
    %18 = vector.multi_reduction <add>, %17, %cst_14 [2] : vector<2x8x128xf32> to vector<2x8xf32>
    %c0_15 = arith.constant 0 : index
    %c0_16 = arith.constant 0 : index
    %19 = vector.load %arg7[%c0_15, %c0_16] : memref<1x1xf32, #tpu.memory_space<vmem>>, vector<1x1xf32>
    %20 = vector.broadcast %19 : vector<1x1xf32> to vector<2x8xf32>
    %21 = arith.addf %18, %20 : vector<2x8xf32>
    %cst_17 = arith.constant dense<0xFF800000> : vector<2xf32>
    %22 = vector.multi_reduction <maximumf>, %21, %cst_17 [1] : vector<2x8xf32> to vector<2xf32>
    %23 = vector.shape_cast %22 : vector<2xf32> to vector<2x1xf32>
    %24 = vector.broadcast %23 : vector<2x1xf32> to vector<2x8xf32>
    %25 = arith.subf %21, %24 : vector<2x8xf32>
    %26 = math.exp %25 : vector<2x8xf32>
    %cst_18 = arith.constant dense<0.000000e+00> : vector<2xf32>
    %27 = vector.multi_reduction <add>, %26, %cst_18 [1] : vector<2x8xf32> to vector<2xf32>
    %28 = vector.shape_cast %27 : vector<2xf32> to vector<2x1xf32>
    %29 = vector.broadcast %28 : vector<2x1xf32> to vector<2x8xf32>
    %30 = arith.divf %26, %29 : vector<2x8xf32>
    %31 = vector.shape_cast %30 : vector<2x8xf32> to vector<2x8x1xf32>
    %32 = vector.broadcast %31 : vector<2x8x1xf32> to vector<2x8x32xf32>
    %33 = arith.mulf %32, %2 : vector<2x8x32xf32>
    %cst_19 = arith.constant dense<0.000000e+00> : vector<2x32xf32>
    %34 = vector.multi_reduction <add>, %33, %cst_19 [1] : vector<2x8x32xf32> to vector<2x32xf32>
    %c0_20 = arith.constant 0 : index
    %c0_21 = arith.constant 0 : index
    %35 = vector.load %arg10[%c0_20, %c0_21] : memref<2x8xf32, #tpu.memory_space<vmem>>, vector<2x8xf32>
    tpu.vector_store %arg10[%c0_20, %c0_21], %21 {strides = array<i32>} : memref<2x8xf32, #tpu.memory_space<vmem>>, vector<2x8xf32>,
    %c0_22 = arith.constant 0 : index
    %c0_23 = arith.constant 0 : index
    %36 = vector.load %arg9[%c0_22, %c0_23] : memref<2x8xf32, #tpu.memory_space<vmem>>, vector<2x8xf32>
    tpu.vector_store %arg9[%c0_22, %c0_23], %30 {strides = array<i32>} : memref<2x8xf32, #tpu.memory_space<vmem>>, vector<2x8xf32>,
    %c0_24 = arith.constant 0 : index
    %c0_25 = arith.constant 0 : index
    %37 = vector.load %arg8[%c0_24, %c0_25] : memref<2x32xf32, #tpu.memory_space<vmem>>, vector<2x32xf32>
    tpu.vector_store %arg8[%c0_24, %c0_25], %34 {strides = array<i32>} : memref<2x32xf32, #tpu.memory_space<vmem>>, vector<2x32xf32>,
    return
  }
  func.func @transform_0(%arg0: i32) -> (i32, i32, i32) {
    %c0_i32 = arith.constant 0 : i32
    %c0_i32_0 = arith.constant 0 : i32
    %c0_i32_1 = arith.constant 0 : i32
    return %c0_i32, %arg0, %c0_i32_0 : i32, i32, i32
  }
  func.func @transform_1(%arg0: i32) -> (i32, i32, i32) {
    %c0_i32 = arith.constant 0 : i32
    %c0_i32_0 = arith.constant 0 : i32
    %c0_i32_1 = arith.constant 0 : i32
    return %arg0, %c0_i32, %c0_i32_0 : i32, i32, i32
  }
  func.func @transform_2(%arg0: i32) -> (i32, i32) {
    %c0_i32 = arith.constant 0 : i32
    %c0_i32_0 = arith.constant 0 : i32
    %c0_i32_1 = arith.constant 0 : i32
    return %c0_i32, %c0_i32_0 : i32, i32
  }
  func.func @transform_3(%arg0: i32) -> (i32, i32) {
    %c0_i32 = arith.constant 0 : i32
    %c0_i32_0 = arith.constant 0 : i32
    %c0_i32_1 = arith.constant 0 : i32
    return %c0_i32, %c0_i32_0 : i32, i32
  }
  func.func @transform_4(%arg0: i32) -> (i32, i32) {
    %c0_i32 = arith.constant 0 : i32
    %c0_i32_0 = arith.constant 0 : i32
    %c0_i32_1 = arith.constant 0 : i32
    return %c0_i32, %c0_i32_0 : i32, i32
  }
  func.func @transform_5(%arg0: i32) -> (i32, i32) {
    %c0_i32 = arith.constant 0 : i32
    %c0_i32_0 = arith.constant 0 : i32
    %c0_i32_1 = arith.constant 0 : i32
    return %c0_i32, %c0_i32_0 : i32, i32
  }
  func.func @transform_6(%arg0: i32) -> (i32, i32) {
    %c0_i32 = arith.constant 0 : i32
    %c0_i32_0 = arith.constant 0 : i32
    %c0_i32_1 = arith.constant 0 : i32
    return %c0_i32, %c0_i32_0 : i32, i32
  }
  func.func @transform_7(%arg0: i32) -> (i32, i32) {
    %c0_i32 = arith.constant 0 : i32
    %c0_i32_0 = arith.constant 0 : i32
    return %arg0, %c0_i32 : i32, i32
  }
  func.func @transform_8(%arg0: i32) -> (i32, i32) {
    %c0_i32 = arith.constant 0 : i32
    %c0_i32_0 = arith.constant 0 : i32
    return %arg0, %c0_i32 : i32, i32
  }
  func.func @transform_9(%arg0: i32) -> (i32, i32) {
    %c0_i32 = arith.constant 0 : i32
    %c0_i32_0 = arith.constant 0 : i32
    return %arg0, %c0_i32 : i32, i32
  }
}

</mosaic_0001>

<bundles_post_ra>
// kernel: tpu_custom_call.1
= control target key start
LH: loop header
LB: loop body
LE: loop exit
PB: predicated region body
PF: predicated region fallthrough
CT: control target
= control target key end

     0   :  { %s883_s0 = inlined_call_operand.vmem [shape: f32[1,2,32], index: 0, kind: input, shape index: {}]   ;;  %s884_s1 = inlined_call_operand.hbm [shape: f32[2,8,32], index: 1, kind: input, shape index: {}]   ;;  %s885_s2 = inlined_call_operand.hbm [shape: f32[32,128], index: 2, kind: input, shape index: {}]   ;;  %s886_s3 = inlined_call_operand.hbm [shape: f32[32,128], index: 3, kind: input, shape index: {}]   ;;  %s887_s4 = inlined_call_operand.vmem [shape: f32[1,128], index: 4, kind: input, shape index: {}]   ;;  %s888_s5 = inlined_call_operand.vmem [shape: f32[1,128], index: 5, kind: input, shape index: {}]   ;;  %s889_s6 = inlined_call_operand.<no memory space> [shape: f32[1,1], index: 6, kind: input, shape index: {}]   ;;  %s890_s7 = inlined_call_operand.hbm [shape: f32[2,32], index: 7, kind: output, shape index: {0}]   ;;  %s891_s8 = inlined_call_operand.hbm [shape: f32[2,8], index: 8, kind: output, shape index: {1}]   ;;  %s892_s9 = inlined_call_operand.hbm [shape: f32[2,8], index: 9, kind: output, shape index: {2}]  }
   0x1   :  { %v15_v0 = vstv %s889_s6 }
   0x2   :  { %16 = vst [vmem:[#allocation2] sm:$0x1] %v15_v0 }
   0x3   :  { %17 = vsyncpa [#allocation4], 0 }
   0x4   :  { %18 = vsyncpa [#allocation7], 0 }
   0x5   :  { %19 = vsyncpa [#allocation5], 0 }
   0x6   :  { %20 = vsyncpa [#allocation11], 0  ;;  %s686_s11 = smov [#allocation6]   ;;  %s687_s13 = smov [#allocation3]  }
   0x7   :  { %s40_s12 = sshll.u32 %s686_s11, 4  ;;  %s28_s14 = sshll.u32 %s687_s13, 4  ;;  %s41_s12 = int_to_ptr.vmem [resolvable:$true] %s40_s12  ;;  %s752_s14 = int_to_ptr.vmem [resolvable:$true] %s28_s14 }
   0x8   :  { %s546_s17 = scalar_lea.hbm %s885_s2, 512 }
   0x9   :  { %p547_p0 = scmp.ne.s32.totalorder %s885_s2, %s546_s17  ;;  %p550_p1 = scmp.lt.u32.totalorder %s546_s17, %s885_s2 }
   0xb   :  { %p552_p2 = pnand %p550_p1, %p547_p0 }
   0xd   :  { %555 = shalt.err (!%p552_p2)
}
   0xe   :  { %s556_s21 = scalar_lea.vmem %s41_s12, 512  ;;  %p561_p4 = scmp.lt.s32.totalorder %s41_s12, %s41_s12 }
   0xf   :  { %p557_p3 = scmp.ne.s32.totalorder %s41_s12, %s556_s21  ;;  %p562_p5 = scmp.lt.s32.totalorder %s556_s21, %s556_s21 }
  0x11   :  { %p563_p6 = por %p562_p5, %p561_p4 }
  0x13   :  { %p564_p7 = pnand %p563_p6, %p557_p3 }
  0x15   :  { %567 = shalt.err (!%p564_p7)
}
  0x16   :  { %s688_s22 = smov 128   ;;  %s689_s23 = smov 8  }
  0x17   :  { %46 = dma.hbm_to_vmem [thread:$0]  %s885_s2, 512, %s41_s12, [#allocation7], %s688_s22, %s688_s22, %s689_s23  }
  0x18   :  { %s568_s28 = scalar_lea.hbm %s884_s1, 256 }
  0x19   :  { %p569_p8 = scmp.ne.s32.totalorder %s884_s1, %s568_s28  ;;  %p572_p9 = scmp.lt.u32.totalorder %s568_s28, %s884_s1 }
  0x1b   :  { %p574_p10 = pnand %p572_p9, %p569_p8 }
  0x1d   :  { %577 = shalt.err (!%p574_p10)
}
  0x1e   :  { %s578_s13 = scalar_lea.vmem %s752_s14, 256  ;;  %p583_p12 = scmp.lt.s32.totalorder %s752_s14, %s752_s14 }
  0x1f   :  { %p579_p11 = scmp.ne.s32.totalorder %s752_s14, %s578_s13  ;;  %p584_p13 = scmp.lt.s32.totalorder %s578_s13, %s578_s13 }
  0x21   :  { %p585_p0 = por %p584_p13, %p583_p12 }
  0x23   :  { %p586_p1 = pnand %p585_p0, %p579_p11 }
  0x25   :  { %589 = shalt.err (!%p586_p1)
}
  0x26   :  { %34 = dma.hbm_to_vmem [thread:$0]  %s884_s1, 256, %s752_s14, [#allocation4], %s688_s22, %s688_s22, %s689_s23  }
  0x27   :  { %s690_s15 = smov [#allocation8]   ;;  %s590_s19 = scalar_lea.hbm %s886_s3, 512 }
  0x28   :  { %s52_s16 = sshll.u32 %s690_s15, 4  ;;  %p591_p2 = scmp.ne.s32.totalorder %s886_s3, %s590_s19  ;;  %s53_s16 = int_to_ptr.vmem [resolvable:$true] %s52_s16 }
  0x29   :  { %p594_p3 = scmp.lt.u32.totalorder %s590_s19, %s886_s3 }
  0x2b   :  { %p596_p4 = pnand %p594_p3, %p591_p2 }
  0x2d   :  { %599 = shalt.err (!%p596_p4)
}
  0x2e   :  { %s600_s25 = scalar_lea.vmem %s53_s16, 512  ;;  %p605_p6 = scmp.lt.s32.totalorder %s53_s16, %s53_s16 }
  0x2f   :  { %p601_p5 = scmp.ne.s32.totalorder %s53_s16, %s600_s25  ;;  %p606_p7 = scmp.lt.s32.totalorder %s600_s25, %s600_s25 }
  0x31   :  { %p607_p8 = por %p606_p7, %p605_p6 }
  0x33   :  { %p608_p9 = pnand %p607_p8, %p601_p5 }
  0x35   :  { %611 = shalt.err (!%p608_p9)
}
  0x36   :  { %58 = dma.hbm_to_vmem [thread:$0]  %s886_s3, 512, %s53_s16, [#allocation7], %s688_s22, %s688_s22, %s689_s23  }
  0x37   :  { %678 = dma.done.wait [#allocation4], 256  }
  0x38   :  { %679 = vsyncadd [#allocation4], 4294967040 }
  0x39   :  { %680 = dma.done.wait [#allocation7], 1024  }
  0x3a   :  { %681 = vsyncadd [#allocation7], 4294966272  ;;  %v691_v1 = vmov 0.0|0.0   ;;  %vm692_vm0 = vmmov 0   ;;  %v693_v2 = vmov 0.0   ;;  %v77_v3 = vld [vmem:[#allocation8] sm:$0xff]  ;;  %v170_v22 = vlaneseq }
  0x3b   :  { %505 = vmatprep.subr.bf16.mxu0 %v691_v1  ;;  %491 = vmatprep.mubr.msk.f32.mxu0 %vm692_vm0, %v693_v2  ;;  %v78_v4 = vld [vmem:[#allocation8 + $0x8] sm:$0xff]  ;;  %v79_v5 = vld [vmem:[#allocation8 + $0x10] sm:$0xff]  ;;  %v80_v7 = vld [vmem:[#allocation8 + $0x18] sm:$0xff]  ;;  %vm88_vm1 = vcmask 261120   ;;  %v694_v19 = vmov 0   ;;  %vm319_vm2 = vcmask 1041409  }
  0x3c   :  { %v506_v6 = vpack.c.bf16 %v78_v4, %v77_v3  ;;  %v162_v8 = vld [vmem:[#allocation6] sm:$0xff]  ;;  %v163_v9 = vld [vmem:[#allocation6 + $0x8] sm:$0xff]  ;;  %v164_v11 = vld [vmem:[#allocation6 + $0x10] sm:$0xff]  ;;  %v509_v13 = vpack.c.bf16 %v80_v7, %v79_v5  ;;  %532 = vset.pattern.permute.xlu1 %v694_v19  ;;  %533 = vset.pattern.permute.xlu0 %v694_v19  ;;  %v695_v20 = vmov 1966171168   ;;  %v816_v24 = vshrl.u32 %v170_v22, 7 }
  0x3d   :  { %v511_v10 = vpack.c.bf16 %v163_v9, %v162_v8  ;;  %v165_v12 = vld [vmem:[#allocation6 + $0x18] sm:$0xff]  ;;  %v804_v15 = vld [vmem:[#allocation3] sm:$0xff]  ;;  %v471_v18 = vld [vmem:[#allocation2] ss:$0 sm:$0xff]  ;;  %v168_v21 = vunpack.c.l.s4 %v695_v20  ;;  %v310_v46 = vand.u32 127, %v170_v22  ;;  %vm322_vm3 = vcmask 58368  }
  0x3e   :  { %507 = vmatpush3.bf16.msra.mxu0 %v506_v6  ;;  %v515_v14 = vpack.c.bf16 %v165_v12, %v164_v11  ;;  %502 = vmatprep.mubr.msk.f32.mxu1 %vm88_vm1, %v804_v15  ;;  %v74_v16 = vld [vmem:[%s883_s0] sm:$0x3]  ;;  %v811_v17 = vld [vmem:[#allocation3 + $0x8] sm:$0xff]  ;;  %v191_v32 = vsub.s32 0, %v816_v24  ;;  %v333_v57 = vsub.s32 1, %v816_v24  ;;  %s697_s28 = smov [#allocation12]  }
  0x3f   :  { %508 = vmatprep.subr.bf16.mxu0 %v691_v1  ;;  %512 = vmatprep.subr.bf16.mxu1 %v511_v10  ;;  %v169_v23 = vunpack.c.0.s8 %v168_v21  ;;  %v466_v25 = vld [vmem:[%s887_s4] ss:$0 sm:$0xff]  ;;  %v313_v49 = vsub.s32 %v310_v46, %v816_v24  ;;  %s449_s29 = sshll.u32 %s697_s28, 4  ;;  %s838_s29 = int_to_ptr.vmem [resolvable:$true] %s449_s29 }
  0x40   :  { %514 = vmatpush3.bf16.msra.mxu1 %v511_v10  ;;  %302 = vperm.xlu1 %532, %v471_v18   ;;  %v470_v41 = vld [vmem:[%s888_s5] ss:$0 sm:$0xff]  ;;  %s696_s5 = smov [#allocation10]  }
  0x41   :  { %516 = vmatprep.subr.bf16.mxu1 %v515_v14  ;;  %v172_v26 = vsub.s32 %v169_v23, %v816_v24  ;;  %s439_s27 = sshll.u32 %s696_s5, 4  ;;  %s440_s27 = int_to_ptr.vmem [resolvable:$true] %s439_s27 }
  0x42   :  { %510 = vmatpush3.bf16.msra.mxu0 %v509_v13  ;;  %s612_s30 = scalar_lea.vmem %s440_s27, 32  ;;  %p617_p11 = scmp.lt.s32.totalorder %s440_s27, %s440_s27 }
  0x43   :  { %p613_p10 = scmp.ne.s32.totalorder %s440_s27, %s612_s30  ;;  %p618_p12 = scmp.lt.s32.totalorder %s612_s30, %s612_s30 }
  0x44   :  { %518 = vmatpush3.bf16.msra.mxu1 %v515_v14 }
  0x45   :  { %492 = vmatmul.mubr.msk.f32.vlgmr.msra.gmra.mrb[0].mxu0 %vm88_vm1, %v74_v16  ;;  %p619_p13 = por %p618_p12, %p617_p11 }
  0x47   :  { %503 = vmatmul.mubr.msk.f32.vlgmr.msra.gmra.mrb[0].mxu1 %vm88_vm1, %v811_v17  ;;  %p620_p0 = pnand %p619_p13, %p613_p10 }
  0xbf   :  { %v303_v47 = vpop.permute.xlu1 %302 }
 0x118   :  { %v158_v27 = vpop.f32.mrb[0].mxu0 }
 0x119   :  { %v159_v28 = vadd.f32 %v466_v25, %v158_v27  ;;  %v493_v29 = vpop.f32.mrb[1].mxu0 }
 0x11a   :  { %v504_v30 = vpop.f32.mrb[0].mxu1 }
 0x11b   :  { %v173_v31 = vrot.slane %v159_v28, %v172_v26  ;;  %v271_v33 = vpop.f32.mrb[1].mxu1 }
 0x11d   :  { %v174_v34 = vcombine.high %v173_v31, %v173_v31  ;;  %v181_v35 = vrot.slane %v173_v31, %v172_v26 }
 0x11f   :  { %v188_v36 = vrot.slane %v174_v34, %v172_v26  ;;  %v192_v37 = vrot.slane %v181_v35, %v191_v32 }
 0x121   :  { %v196_v38 = vrot.slane %v188_v36, %v191_v32  ;;  %v272_v39 = vadd.f32 %v271_v33, %v192_v37 }
 0x123   :  { %v277_v40 = vadd.f32 %v504_v30, %v196_v38  ;;  %534 = vtanh.f32 %v272_v39 }
 0x125   :  { %536 = vtanh.f32 %v277_v40 }
 0x12d   :  { %v535_v42 = vpop.eup %534 }
 0x12e   :  { %v289_v43 = vmul.f32 %v535_v42, %v470_v41 }
 0x12f   :  { %v537_v44 = vpop.eup %536 }
 0x130   :  { %291 = vadd.xlane.f32.xlu0 %v289_v43  ;;  %v290_v45 = vmul.f32 %v537_v44, %v470_v41 }
 0x134   :  { %293 = vadd.xlane.f32.xlu0 %v290_v45 }
 0x1bd   :  { %v292_v48 = vpop.xlane.xlu0 %291 }
 0x1be   :  { %v305_v50 = vadd.f32 %v303_v47, %v292_v48 }
 0x1c0   :  { %v314_v53 = vrot.slane %v305_v50, %v313_v49 }
 0x1c1   :  { %v294_v51 = vpop.xlane.xlu0 %293 }
 0x1c2   :  { %v306_v52 = vadd.f32 %v303_v47, %v294_v51 }
 0x1c4   :  { %v318_v54 = vrot.slane %v306_v52, %v313_v49 }
 0x1c6   :  { %v320_v55 = vsel %vm319_vm2, %v318_v54, %v314_v53 }
 0x1c7   :  { %v323_v56 = vsel %vm322_vm3, %v320_v55, -inf  ;;  %405 = vst.msk [vmem:[#allocation12] sm:$0x3] %vm322_vm3, %v320_v55 }
 0x1c8   :  { %324 = vmax.xlane.f32.xlu1 %v323_v56 }
 0x255   :  { %v325_v58 = vpop.xlane.xlu1 %324 }
 0x256   :  { %v330_v59 = vrot.slane %v325_v58, %v191_v32  ;;  %v334_v60 = vrot.slane %v325_v58, %v333_v57 }
 0x258   :  { %v337_v61 = vsub.f32 %v305_v50, %v330_v59  ;;  %v338_v62 = vsub.f32 %v306_v52, %v334_v60 }
 0x25a   :  { %v339_v63 = vmul.f32 1.442695, %v337_v61  ;;  %v341_v0 = vmul.f32 1.442695, %v338_v62 }
 0x25c   :  { %538 = vpow2.f32 %v339_v63 }
 0x25d   :  { %540 = vpow2.f32 %v341_v0 }
 0x266   :  { %v539_v1 = vpop.eup %538 }
 0x267   :  { %v541_v2 = vpop.eup %540  ;;  %346 = vperm.xlu0 %533, %v539_v1  }
 0x268   :  { %349 = vperm.xlu1 %532, %v541_v2  }
 0x2e6   :  { %v347_v3 = vpop.permute.xlu0 %346 }
 0x2e7   :  { %v350_v4 = vpop.permute.xlu1 %349  ;;  %v354_v5 = vrot.slane %v347_v3, %v313_v49 }
 0x2e8   :  { %v358_v6 = vrot.slane %v350_v4, %v313_v49 }
 0x2ea   :  { %v359_v7 = vsel %vm319_vm2, %v358_v6, %v354_v5 }
 0x2eb   :  { %v361_v8 = vsel %vm322_vm3, %v359_v7, 0.0 }
 0x2ec   :  { %362 = vadd.xlane.f32.xlu0 %v361_v8 }
 0x379   :  { %v363_v9 = vpop.xlane.xlu0 %362 }
 0x37a   :  { %v368_v10 = vrot.slane %v363_v9, %v191_v32  ;;  %v372_v11 = vrot.slane %v363_v9, %v333_v57 }
 0x37c   :  { %542 = vrcp.f32 %v368_v10 }
 0x37d   :  { %544 = vrcp.f32 %v372_v11 }
 0x386   :  { %v543_v12 = vpop.eup %542 }
 0x387   :  { %v376_v13 = vmul.f32 %v543_v12, %v539_v1  ;;  %v545_v14 = vpop.eup %544 }
 0x388   :  { %v378_v16 = vmul.f32 %v545_v14, %v541_v2 }
 0x389   :  { %381 = vperm.xlu1 %532, %v376_v13  }
 0x38d   :  { %386 = vperm.xlu1 %532, %v378_v16  }
 0x408   :  { %v382_v18 = vpop.permute.xlu1 %381 }
 0x409   :  { %v389_v19 = vmul.f32 %v382_v18, %v804_v15  ;;  %v409_v23 = vrot.slane %v382_v18, %v313_v49 }
 0x40b   :  { %v391_v20 = vsel %vm88_vm1, %v389_v19, 0.0 }
 0x40c   :  { %v392_v21 = vrot.slane %v391_v20, 4  ;;  %v387_v22 = vpop.permute.xlu1 %386 }
 0x40d   :  { %v390_v24 = vmul.f32 %v387_v22, %v811_v17  ;;  %v413_v25 = vrot.slane %v387_v22, %v313_v49 }
 0x40e   :  { %v393_v26 = vadd.f32 %v392_v21, %v391_v20 }
 0x40f   :  { %v398_v27 = vsel %vm88_vm1, %v390_v24, 0.0  ;;  %v414_v28 = vsel %vm319_vm2, %v413_v25, %v409_v23 }
 0x410   :  { %v394_v15 = vrot.slane %v393_v26, 2  ;;  %v399_v29 = vrot.slane %v398_v27, 4  ;;  %416 = vst.msk [vmem:[#allocation10] sm:$0x3] %vm322_vm3, %v414_v28 }
 0x411   :  { %623 = shalt.err (!%p620_p0)
}
 0x412   :  { %s624_s13 = scalar_lea.hbm %s891_s8, 32 }
 0x413   :  { %p625_p1 = scmp.ne.s32.totalorder %s891_s8, %s624_s13  ;;  %p628_p2 = scmp.lt.u32.totalorder %s624_s13, %s891_s8 }
 0x415   :  { %p630_p3 = pnand %p628_p2, %p625_p1 }
 0x417   :  { %633 = shalt.err (!%p630_p3)
}
 0x418   :  { %442 = dma.vmem_to_hbm [thread:$0]  %s440_s27, 32, %s891_s8, [#allocation11]   ;;  %v395_v17 = vadd.f32 %v394_v15, %v393_v26  ;;  %v400_v30 = vadd.f32 %v399_v29, %v398_v27 }
 0x419   :  { %s634_s19 = scalar_lea.vmem %s838_s29, 32  ;;  %p639_p5 = scmp.lt.s32.totalorder %s838_s29, %s838_s29 }
 0x41a   :  { %p635_p4 = scmp.ne.s32.totalorder %s838_s29, %s634_s19  ;;  %p640_p6 = scmp.lt.s32.totalorder %s634_s19, %s634_s19 }
 0x41c   :  { %p641_p7 = por %p640_p6, %p639_p5 }
 0x41e   :  { %p642_p8 = pnand %p641_p7, %p635_p4 }
 0x420   :  { %645 = shalt.err (!%p642_p8)
}
 0x421   :  { %s646_s21 = scalar_lea.hbm %s892_s9, 32 }
 0x422   :  { %p647_p9 = scmp.ne.s32.totalorder %s892_s9, %s646_s21  ;;  %p650_p10 = scmp.lt.u32.totalorder %s646_s21, %s892_s9 }
 0x424   :  { %p652_p11 = pnand %p650_p10, %p647_p9 }
 0x426   :  { %655 = shalt.err (!%p652_p11)
}
 0x427   :  { %452 = dma.vmem_to_hbm [thread:$0]  %s838_s29, 32, %s892_s9, [#allocation11]   ;;  %v401_v31 = vrot.slane %v400_v30, 2  ;;  %v396_v32 = vrot.slane %v395_v17, 1  ;;  %vm421_vm4 = vcmask 254976  }
 0x428   :  { %s698_s22 = smov [#allocation9]  }
 0x429   :  { %v402_v33 = vadd.f32 %v401_v31, %v400_v30  ;;  %s429_s0 = sshll.u32 %s698_s22, 4  ;;  %v397_v36 = vadd.f32 %v396_v32, %v395_v17  ;;  %s430_s0 = int_to_ptr.vmem [resolvable:$true] %s429_s0 }
 0x42a   :  { %s656_s23 = scalar_lea.vmem %s430_s0, 32  ;;  %p661_p13 = scmp.lt.s32.totalorder %s430_s0, %s430_s0 }
 0x42b   :  { %v403_v34 = vrot.slane %v402_v33, 1  ;;  %p657_p12 = scmp.ne.s32.totalorder %s430_s0, %s656_s23  ;;  %p662_p0 = scmp.lt.s32.totalorder %s656_s23, %s656_s23 }
 0x42d   :  { %v404_v35 = vadd.f32 %v403_v34, %v402_v33  ;;  %p663_p1 = por %p662_p0, %p661_p13 }
 0x42f   :  { %v419_v37 = vsel %vm319_vm2, %v404_v35, %v397_v36  ;;  %p664_p2 = pnand %p663_p1, %p657_p12 }
 0x430   :  { %422 = vst.msk [vmem:[#allocation9] sm:$0x3] %vm421_vm4, %v419_v37 }
 0x431   :  { %667 = shalt.err (!%p664_p2)
}
 0x432   :  { %s668_s26 = scalar_lea.hbm %s890_s7, 32 }
 0x433   :  { %p669_p3 = scmp.ne.s32.totalorder %s890_s7, %s668_s26  ;;  %p672_p4 = scmp.lt.u32.totalorder %s668_s26, %s890_s7 }
 0x435   :  { %p674_p5 = pnand %p672_p4, %p669_p3 }
 0x437   :  { %677 = shalt.err (!%p674_p5)
}
 0x438   :  { %432 = dma.vmem_to_hbm [thread:$0]  %s430_s0, 32, %s890_s7, [#allocation5]  }
 0x439   :  { %682 = dma.done.wait [#allocation5], 32  }
 0x43a   :  { %683 = vsyncadd [#allocation5], 4294967264 }
 0x43b   :  { %684 = dma.done.wait [#allocation11], 64  }
 0x43c   :  { %685 = vsyncadd [#allocation11], 4294967232 }
 0x43d   :  { %462 = vsyncpa [#allocation4], 1 }
 0x43e   :  { %463 = vsyncpa [#allocation7], 1 }
 0x43f   :  { %464 = vsyncpa [#allocation5], 1 }
 0x440   :  { %465 = vsyncpa [#allocation11], 1 }

</bundles_post_ra>
